<compile_context>
chip_gen: v5e
topology: v5e:2x2
jax: 0.10.0
libtpu: 0.0.40
codegen_flags: <defaults>
</compile_context>

<pallas_src>
import functools

import jax
import jax.numpy as jnp
from jax.experimental import pallas as pl
from jax.experimental.pallas import tpu as pltpu


def _rince_v2_kernel(pos_ref, neg_ref, out_ref, acc_ref, *, q, lam, n_total):
    """Grid: (batch_tile i, neg_tile k). acc_ref holds running sum_k exp(neg)."""
    k = pl.program_id(1)
    nk = pl.num_programs(1)
    tn = neg_ref.shape[-1]
    has_tail = (n_total % tn) != 0           # only possible when N > tn
    lane_accum = (tn % 128) == 0             # lane-dense accumulator path

    @pl.when(k == 0)
    def _init():
        acc_ref[...] = jnp.zeros_like(acc_ref)

    def partial_expsum(mask_tail):
        e = jnp.exp(neg_ref[...].astype(jnp.float32))            # (TB, TN)
        if mask_tail:
            # Padded N columns of the tail tile would contribute garbage exp
            # values; select() discards them without propagating inf/NaN.
            col = k * tn + jax.lax.broadcasted_iota(jnp.int32, e.shape, 1)
            e = jnp.where(col < n_total, e, 0.0)
        if lane_accum:
            # Lane-aligned 128-wide slices: pure VPU vreg adds, no XLU work
            # and no relayout. The 128 -> 1 reduce is deferred to finalize.
            s = e[:, 0:128]
            for c in range(1, tn // 128):
                s = s + e[:, c * 128:(c + 1) * 128]
            return s                                             # (TB, 128)
        # Small-problem fallback (tile narrower than 128 lanes).
        return jnp.sum(e, axis=1, keepdims=True)                 # (TB, 1)

    if has_tail:
        @pl.when(k < nk - 1)
        def _acc_full():
            acc_ref[...] += partial_expsum(False)

        @pl.when(k == nk - 1)
        def _acc_tail():
            acc_ref[...] += partial_expsum(True)
    else:
        acc_ref[...] += partial_expsum(False)

    @pl.when(k == nk - 1)
    def _finalize():
        # Single cross-lane reduce of the lane-dense accumulator.
        neg_sum = jnp.sum(acc_ref[...], axis=1, keepdims=True)   # (TB, 1)
        pos = pos_ref[...].astype(jnp.float32)                   # (TB, 1)
        exp_sum = jnp.exp(pos) + neg_sum                         # exp_pos + sum exp(neg)
        term1 = -jnp.exp(q * pos)                                # == -(exp(pos) ** q)
        x = exp_sum * lam
        term2 = jnp.sqrt(x) if q == 0.5 else x ** q              # (lam * exp_sum) ** q
        out_ref[...] = ((term1 + term2) * (1.0 / q)).astype(out_ref.dtype)


def _round_up(x, m):
    return ((x + m - 1) // m) * m


def rince_v2(pos, neg, q=0.5, lam=0.025, *, tb=None, tn=8192):
    """Pallas-TPU RINCEV2 loss. Returns a scalar float32.

    pos: (B, 1), neg: (B, N). Pass `neg` in its storage dtype (bf16 is fine
    and ~halves HBM traffic); the kernel upcasts to f32 internally, matching
    the PyTorch module's .float(). No log-sum-exp stabilization (same as the
    reference): logits must stay below ~88 in magnitude.

    tb: batch tile. Default (None) auto-picks a multiple of 16 giving >= 2
        batch tiles whenever B > 16 (so both v7x TensorCores are used),
        capped at 256 rows.
    tn: negative tile. Default 8192 -> 8 MiB f32 block (16 MiB double
        buffered); vmem_limit_bytes is raised so this fits all of v5e/v6e/v7x.
        User overrides must be multiples of (8 f32 / 16 bf16, 128) when the
        array exceeds the tile, else BlockSpec tiling fails at compile time.
    """
    assert pos.ndim == 2 and pos.shape[1] == 1, "pos must be (B, 1)"
    assert neg.ndim == 2 and neg.shape[0] == pos.shape[0], "neg must be (B, N)"
    B, N = neg.shape

    if tb is None:
        # >= 2 batch tiles whenever possible (v7x megacore sharding on the
        # 'parallel' axis); rows a multiple of 16 for bf16-legal tiling.
        tb_eff = B if B <= 16 else min(256, _round_up(-(-B // 2), 16))
    else:
        tb_eff = B if B <= tb else tb
    tn_eff = N if N <= tn else tn

    grid = (pl.cdiv(B, tb_eff), pl.cdiv(N, tn_eff))
    acc_lanes = 128 if (tn_eff % 128) == 0 else 1

    kernel = functools.partial(
        _rince_v2_kernel, q=float(q), lam=float(lam), n_total=N)

    cost = pl.CostEstimate(
        flops=2 * B * N,
        transcendentals=B * N + 2 * B,
        bytes_accessed=B * N * neg.dtype.itemsize + B * pos.dtype.itemsize + B * 4,
    )

    per_row = pl.pallas_call(
        kernel,
        out_shape=jax.ShapeDtypeStruct((B, 1), jnp.float32),
        grid_spec=pltpu.PrefetchScalarGridSpec(
            num_scalar_prefetch=0,
            grid=grid,
            in_specs=[
                # pos: tiny (TB, 1) column, same block for every k step.
                pl.BlockSpec((tb_eff, 1), lambda i, k: (i, 0)),
                # neg: the big stream, tiled over both batch and negatives.
                pl.BlockSpec((tb_eff, tn_eff), lambda i, k: (i, k)),
            ],
            # Per-row loss, resident across the reduction (k) axis.
            out_specs=pl.BlockSpec((tb_eff, 1), lambda i, k: (i, 0)),
            scratch_shapes=[pltpu.VMEM((tb_eff, acc_lanes), jnp.float32)],
        ),
        compiler_params=pltpu.CompilerParams(
            dimension_semantics=("parallel", "arbitrary"),
            # 16 MiB double-buffered neg + small pos/out/scratch; explicit so
            # v5e's 16 MiB scoped default doesn't reject the tiling. Well
            # under v7x's 64 MiB physical VMEM.
            vmem_limit_bytes=40 * 1024 * 1024,
        ),
        cost_estimate=cost,
    )(pos, neg)

    # Tiny final reduction (B floats) done by XLA in the wrapper.
    return jnp.mean(per_row)


def _reference(pos, neg, q=0.5, lam=0.025):
    """Plain-JAX reference mirroring the PyTorch forward."""
    pos = pos.astype(jnp.float32)
    neg = neg.astype(jnp.float32)
    exp_pos = jnp.exp(pos)[:, 0]
    exp_sum = exp_pos + jnp.sum(jnp.exp(neg), axis=1)
    term1 = -(exp_pos ** q)
    term2 = (exp_sum * lam) ** q
    return jnp.mean((term1 + term2) * (1.0 / q))


if __name__ == "__main__":
    key = jax.random.PRNGKey(0)
    k1, k2, k3, k4, k5, k6 = jax.random.split(key, 6)

    # Case 1: tiny single-tile problem (matches the module's toy sizes).
    B1, N1 = 8, 32
    pos1 = jax.random.normal(k1, (B1, 1), dtype=jnp.float32)
    neg1 = jax.random.normal(k2, (B1, N1), dtype=jnp.float32)
    out1 = jax.block_until_ready(rince_v2(pos1, neg1, q=0.5, lam=0.025))
    ref1 = jax.block_until_ready(_reference(pos1, neg1, q=0.5, lam=0.025))
    assert jnp.allclose(out1, ref1, rtol=1e-5, atol=1e-5), (out1, ref1)

    # Case 2: multi-tile grid with ragged B and N tails (exercises the
    # resident accumulator, tail-only masking, lane-dense scratch, and the
    # parallel batch axis).
    B2, N2 = 20, 300
    pos2 = jax.random.normal(k3, (B2, 1), dtype=jnp.float32)
    neg2 = jax.random.normal(k4, (B2, N2), dtype=jnp.float32)
    out2 = jax.block_until_ready(rince_v2(pos2, neg2, q=0.5, lam=0.025,
                                          tb=8, tn=128))
    ref2 = jax.block_until_ready(_reference(pos2, neg2, q=0.5, lam=0.025))
    assert jnp.allclose(out2, ref2, rtol=1e-5, atol=1e-5), (out2, ref2)

    # Case 3: bf16 negatives (narrow HBM dtype, upcast in-kernel) with the
    # auto batch split (two batch tiles, second one partial).
    B3, N3 = 40, 256
    pos3 = jax.random.normal(k5, (B3, 1), dtype=jnp.float32)
    neg3 = jax.random.normal(k6, (B3, N3), dtype=jnp.float32).astype(jnp.bfloat16)
    out3 = jax.block_until_ready(rince_v2(pos3, neg3, q=0.5, lam=0.025))
    ref3 = jax.block_until_ready(_reference(pos3, neg3, q=0.5, lam=0.025))
    assert jnp.allclose(out3, ref3, rtol=1e-5, atol=1e-5), (out3, ref3)

    print("KERNEL_OK")
</pallas_src>

<mosaic_0001>
module attributes {stable_mosaic.version = 11 : i64} {
  func.func @_rince_v2_kernel(%arg0: i32, %arg1: i32, %arg2: memref<8x1xf32, #tpu.memory_space<vmem>>, %arg3: memref<8x32xf32, #tpu.memory_space<vmem>>, %arg4: memref<8x1xf32, #tpu.memory_space<vmem>>, %arg5: memref<8x1xf32, #tpu.memory_space<vmem>>) attributes {dimension_semantics = [#tpu.dimension_semantics<parallel>, #tpu.dimension_semantics<arbitrary>], iteration_bounds = array<i64: 1, 1>, scalar_prefetch = 0 : i64, scratch_operands = 1 : i64, tpu.core_type = #tpu.core_type<tc>, window_params = [{transform_indices = @transform_0, window_bounds = array<i64: 8, 1>}, {transform_indices = @transform_1, window_bounds = array<i64: 8, 32>}, {transform_indices = @transform_2, window_bounds = array<i64: 8, 1>}]} {
    %c0_i32 = arith.constant 0 : i32
    %0 = arith.cmpi eq, %arg1, %c0_i32 : i32
    %1 = arith.extui %0 : i1 to i32
    %c0_i32_0 = arith.constant 0 : i32
    %2 = arith.cmpi ne, %1, %c0_i32_0 : i32
    scf.if %2 {
      %cst_8 = arith.constant 0.000000e+00 : f32
      %13 = vector.broadcast %cst_8 : f32 to vector<8x1xf32>
      %c0_9 = arith.constant 0 : index
      %c0_10 = arith.constant 0 : index
      %14 = vector.load %arg5[%c0_9, %c0_10] : memref<8x1xf32, #tpu.memory_space<vmem>>, vector<8x1xf32>
      tpu.vector_store %arg5[%c0_9, %c0_10], %13 {strides = array<i32>} : memref<8x1xf32, #tpu.memory_space<vmem>>, vector<8x1xf32>,
    } else {
    }
    %c0 = arith.constant 0 : index
    %c0_1 = arith.constant 0 : index
    %3 = vector.load %arg5[%c0, %c0_1] : memref<8x1xf32, #tpu.memory_space<vmem>>, vector<8x1xf32>
    %c0_2 = arith.constant 0 : index
    %c0_3 = arith.constant 0 : index
    %4 = vector.load %arg3[%c0_2, %c0_3] : memref<8x32xf32, #tpu.memory_space<vmem>>, vector<8x32xf32>
    %5 = math.exp %4 : vector<8x32xf32>
    %cst = arith.constant dense<0.000000e+00> : vector<8xf32>
    %6 = vector.multi_reduction <add>, %5, %cst [1] : vector<8x32xf32> to vector<8xf32>
    %7 = vector.shape_cast %6 : vector<8xf32> to vector<8x1xf32>
    %8 = arith.addf %3, %7 : vector<8x1xf32>
    %c0_4 = arith.constant 0 : index
    %c0_5 = arith.constant 0 : index
    %9 = vector.load %arg5[%c0_4, %c0_5] : memref<8x1xf32, #tpu.memory_space<vmem>>, vector<8x1xf32>
    tpu.vector_store %arg5[%c0_4, %c0_5], %8 {strides = array<i32>} : memref<8x1xf32, #tpu.memory_space<vmem>>, vector<8x1xf32>,
    %c0_i32_6 = arith.constant 0 : i32
    %10 = arith.cmpi eq, %arg1, %c0_i32_6 : i32
    %11 = arith.extui %10 : i1 to i32
    %c0_i32_7 = arith.constant 0 : i32
    %12 = arith.cmpi ne, %11, %c0_i32_7 : i32
    scf.if %12 {
      %c0_8 = arith.constant 0 : index
      %c0_9 = arith.constant 0 : index
      %13 = vector.load %arg5[%c0_8, %c0_9] : memref<8x1xf32, #tpu.memory_space<vmem>>, vector<8x1xf32>
      %cst_10 = arith.constant dense<0.000000e+00> : vector<8xf32>
      %14 = vector.multi_reduction <add>, %13, %cst_10 [1] : vector<8x1xf32> to vector<8xf32>
      %15 = vector.shape_cast %14 : vector<8xf32> to vector<8x1xf32>
      %c0_11 = arith.constant 0 : index
      %c0_12 = arith.constant 0 : index
      %16 = vector.load %arg2[%c0_11, %c0_12] : memref<8x1xf32, #tpu.memory_space<vmem>>, vector<8x1xf32>
      %17 = math.exp %16 : vector<8x1xf32>
      %18 = arith.addf %17, %15 : vector<8x1xf32>
      %cst_13 = arith.constant 5.000000e-01 : f32
      %19 = vector.broadcast %cst_13 : f32 to vector<8x1xf32>
      %20 = arith.mulf %19, %16 : vector<8x1xf32>
      %21 = math.exp %20 : vector<8x1xf32>
      %cst_14 = arith.constant 0.000000e+00 : f32
      %22 = vector.broadcast %cst_14 : f32 to vector<8x1xf32>
      %23 = arith.subf %22, %21 : vector<8x1xf32>
      %cst_15 = arith.constant 2.500000e-02 : f32
      %24 = vector.broadcast %cst_15 : f32 to vector<8x1xf32>
      %25 = arith.mulf %18, %24 : vector<8x1xf32>
      %26 = math.sqrt %25 : vector<8x1xf32>
      %27 = arith.addf %23, %26 : vector<8x1xf32>
      %cst_16 = arith.constant 2.000000e+00 : f32
      %28 = vector.broadcast %cst_16 : f32 to vector<8x1xf32>
      %29 = arith.mulf %27, %28 : vector<8x1xf32>
      %c0_17 = arith.constant 0 : index
      %c0_18 = arith.constant 0 : index
      %30 = vector.load %arg4[%c0_17, %c0_18] : memref<8x1xf32, #tpu.memory_space<vmem>>, vector<8x1xf32>
      tpu.vector_store %arg4[%c0_17, %c0_18], %29 {strides = array<i32>} : memref<8x1xf32, #tpu.memory_space<vmem>>, vector<8x1xf32>,
    } else {
    }
    return
  }
  func.func @transform_0(%arg0: i32, %arg1: i32) -> (i32, i32) {
    %c0_i32 = arith.constant 0 : i32
    %c0_i32_0 = arith.constant 0 : i32
    return %arg0, %c0_i32 : i32, i32
  }
  func.func @transform_1(%arg0: i32, %arg1: i32) -> (i32, i32) {
    %c0_i32 = arith.constant 0 : i32
    return %arg0, %arg1 : i32, i32
  }
  func.func @transform_2(%arg0: i32, %arg1: i32) -> (i32, i32) {
    %c0_i32 = arith.constant 0 : i32
    %c0_i32_0 = arith.constant 0 : i32
    return %arg0, %c0_i32 : i32, i32
  }
}

</mosaic_0001>

<bundles_post_ra>
// kernel: tpu_custom_call.1
= control target key start
LH: loop header
LB: loop body
LE: loop exit
PB: predicated region body
PF: predicated region fallthrough
CT: control target
= control target key end

     0   :  { %vm15_vm0 = vcmask 7168   ;;  %v70_v1 = vmov 0.0   ;;  %vm21_vm1 = vcmask 261120   ;;  %s98_s1 = inlined_call_operand.vmem [shape: f32[8,32], index: 1, kind: input, shape index: {}]   ;;  %s99_s0 = inlined_call_operand.vmem [shape: f32[8,1], index: 0, kind: input, shape index: {}]   ;;  %s100_s2 = inlined_call_operand.vmem [shape: f32[8,1], index: 2, kind: output, shape index: {}]  }
   0x1   :  { %v18_v0 = vld [vmem:[%s98_s1] sm:$0xff]  ;;  %16 = vst.msk [vmem:[#allocation2] sm:$0xff] %vm15_vm0, %v70_v1 }
   0x2   :  { %v19_v2 = vmul.f32 1.442695, %v18_v0  ;;  %v33_v5 = vld [vmem:[%s99_s0] sm:$0xff] }
   0x3   :  { %v34_v7 = vmul.f32 1.442695, %v33_v5  ;;  %v37_v14 = vmul.f32 0.5, %v33_v5 }
   0x4   :  { %62 = vpow2.f32 %v19_v2 }
   0x5   :  { %64 = vpow2.f32 %v34_v7  ;;  %v38_v15 = vmul.f32 1.442695, %v37_v14 }
   0x8   :  { %v17_v6 = vld [vmem:[#allocation2] sm:$0xff] }
   0xa   :  { %v63_v3 = vpop.eup %62 }
   0xb   :  { %v22_v4 = vsel %vm21_vm1, %v63_v3, 0.0  ;;  %v65_v10 = vpop.eup %64 }
   0xc   :  { %23 = vadd.xlane.f32.xlu0 %v22_v4 }
  0x7f   :  { %v24_v8 = vpop.xlane.xlu0 %23 }
  0x80   :  { %v25_v9 = vadd.f32 %v24_v8, %v17_v6 }
  0x82   :  { %27 = vst.msk [vmem:[#allocation2] sm:$0xff] %vm15_vm0, %v25_v9 }
  0x89   :  { %v31_v11 = vld [vmem:[#allocation2] sm:$0xff] }
  0x8a   :  { %v36_v12 = vadd.f32 %v65_v10, %v31_v11 }
  0x8c   :  { %v41_v13 = vmul.f32 0.025, %v36_v12 }
  0x8e   :  { %66 = vrsqrt.f32 %v41_v13  ;;  %vm49_vm2 = vcmp.eq.f32.partialorder %v41_v13, inf  ;;  %v52_v25 = vand.u32 2147483648, %v41_v13  ;;  %vm51_vm3 = vcmp.eq.f32.partialorder %v41_v13, 0.0 }
  0x8f   :  { %68 = vpow2.f32 %v38_v15 }
  0x94   :  { %v67_v16 = vpop.eup %66 }
  0x95   :  { %v43_v17 = vmul.f32 %v67_v16, %v41_v13  ;;  %v69_v21 = vpop.eup %68 }
  0x96   :  { %v40_v23 = vsub.f32 0.0, %v69_v21 }
  0x97   :  { %v44_v18 = vmul.f32 %v67_v16, %v43_v17 }
  0x99   :  { %v45_v19 = vmul.f32 0.5, %v44_v18 }
  0x9b   :  { %v46_v20 = vsub.f32 1.5, %v45_v19 }
  0x9d   :  { %v47_v22 = vmul.f32 %v67_v16, %v46_v20 }
  0x9f   :  { %v48_v24 = vmul.f32 %v47_v22, %v41_v13 }
  0xa1   :  { %v50_v26 = vsel %vm49_vm2, %v41_v13, %v48_v24 }
  0xa2   :  { %v53_v27 = vsel %vm51_vm3, %v52_v25, %v50_v26 }
  0xa3   :  { %v54_v28 = vadd.f32 %v53_v27, %v40_v23 }
  0xa5   :  { %v55_v29 = vmul.f32 2.0, %v54_v28 }
  0xa7   :  { %56 = vst.msk [vmem:[%s100_s2] sm:$0xff] %vm15_vm0, %v55_v29 }

</bundles_post_ra>
